<compile_context>
chip_gen: v7x
topology: tpu7x:2x2x1
jax: 0.10.0
libtpu: 0.0.40
codegen_flags: <defaults>
</compile_context>

<pallas_src>
import numpy as np
import jax
import jax.numpy as jnp
from jax.experimental import pallas as pl
from jax.experimental.pallas import tpu as pltpu


def _round_up(x, m):
    return (x + m - 1) // m * m


def _make_kernel(nb, t_pad, kt, cwp, plan):
    """Build the kernel body with the static scatter plan baked in.

    plan: tuple of (tap j, phase p, index shift q, t_in lo, t_in hi) — all static.
    """

    def kernel(x_ref, g_ref, b_ref, o_ref):
        # x_ref: (nb*t_pad, CinVp)        bf16  rows=(batch,time), lanes=C_in*V
        # g_ref: (CinVp, kt*CWp)          bf16  all taps folded, A folded in
        # b_ref: (1, CWp)                 f32   effective bias (A folded in)
        # o_ref: (nb, n_phase, T_ph, CWp) f32   phase-split output block
        n_phase, t_ph = o_ref.shape[1], o_ref.shape[2]

        # Init output with the bias: covers output_padding and untouched cols,
        # and folds the bias add into the (only) full-block write.
        o_ref[...] = jnp.broadcast_to(
            b_ref[...].reshape(1, 1, 1, cwp), (nb, n_phase, t_ph, cwp))

        # One lane-dense MXU matmul (bf16 in, fp32 acc) for every tap at once.
        tmp = jnp.dot(x_ref[...], g_ref[...],
                      preferred_element_type=jnp.float32)     # (nb*t_pad, kt*CWp)
        tmp = tmp.reshape(nb, t_pad, kt * cwp)                 # tile-aligned regroup

        # Static transposed-conv time scatter: phase decomposition makes each
        # tap a contiguous slab accumulate (overlapping taps += correctly).
        for j, p, q, lo, hi in plan:
            o_ref[:, p, lo + q:hi + q, :] += tmp[:, lo:hi, j * cwp:(j + 1) * cwp]

    return kernel


def graph_conv_transpose(x, conv_w, conv_b, A, *, stride_t, pad_t, out_pad_t,
                         dil_t, block_batch=None):
    N, C_in, V, T = x.shape
    _, CK, kt = conv_w.shape
    K, V_in, W_out = A.shape
    assert V_in == V and CK % K == 0
    C_out = CK // K
    st, pt, dl, opt = stride_t, pad_t, dil_t, out_pad_t
    T_out = (T - 1) * st - 2 * pt + dl * (kt - 1) + opt + 1

    CinV = C_in * V
    CW = C_out * W_out
    CinVp = _round_up(CinV, 128)       # contraction dim: full-width vregs / MXU
    CWp = _round_up(CW, 128)           # output lanes: unmasked lane-dense stores
    T_pad = _round_up(T, 8)            # keeps the in-kernel row regroup tile-aligned
    T_ph = -(-T_out // st)             # phases: t_out = st * t_idx + phase

    # ---- batch blocking: tall matmuls, but keep >=2 parallel grid steps ----
    if block_batch is None:
        nb = max(1, 256 // T_pad)
        nb = min(nb, N)
        while nb > 1 and -(-N // nb) < 2:
            nb = (nb + 1) // 2
    else:
        nb = block_batch
    N_pad = _round_up(N, nb)
    n_blocks = N_pad // nb

    # ---- parameter / structure preprocessing (data-independent glue) ----
    # G[(ci,v), (j,c,w)] = sum_k A[k,v,w] * conv_w[ci, c*K+k, j]
    w4 = conv_w.reshape(C_in, C_out, K, kt)
    G = jnp.einsum('kvw,ackj->avjcw', A, w4,
                   precision=jax.lax.Precision.HIGHEST)
    G = G.reshape(CinV, kt, CW)
    G = jnp.pad(G, ((0, CinVp - CinV), (0, 0), (0, CWp - CW)))
    G = G.reshape(CinVp, kt * CWp).astype(jnp.bfloat16)

    # eff_bias[c*W+w] = sum_{k,v} A[k,v,w] * conv_b[c*K+k]
    eff_bias = jnp.einsum('kvw,ck->cw', A, conv_b.reshape(C_out, K),
                          precision=jax.lax.Precision.HIGHEST).reshape(CW)
    eff_bias = jnp.pad(eff_bias, (0, CWp - CW)).reshape(1, CWp).astype(jnp.float32)

    # Static scatter plan of the deconv time axis: t_out = st*t_in - pt + j*dl.
    plan = []
    for j in range(kt):
        off = j * dl - pt
        lo = max(0, -(off // st))                     # first valid t_in
        hi = min(T, (T_out - 1 - off) // st + 1)      # one past last valid t_in
        if lo >= hi:
            continue
        p = off % st                                  # output phase
        q = (off - p) // st                           # shift in phase-plane index
        plan.append((j, p, q, lo, hi))

    # ---- lane-dense input slab: rows = (batch, time), lanes = C_in*V ----
    x_slab = x.reshape(N, CinV, T)
    x_slab = jnp.pad(x_slab,
                     ((0, N_pad - N), (0, CinVp - CinV), (0, T_pad - T)))
    x_slab = x_slab.transpose(0, 2, 1).reshape(N_pad * T_pad, CinVp)
    x_slab = x_slab.astype(jnp.bfloat16)

    kernel = _make_kernel(nb, T_pad, kt, CWp, tuple(plan))

    out = pl.pallas_call(
        kernel,
        out_shape=jax.ShapeDtypeStruct((N_pad, st, T_ph, CWp), jnp.float32),
        grid_spec=pltpu.PrefetchScalarGridSpec(
            num_scalar_prefetch=0,
            grid=(n_blocks,),
            in_specs=[
                pl.BlockSpec((nb * T_pad, CinVp), lambda b: (b, 0)),
                pl.BlockSpec((CinVp, kt * CWp), lambda b: (0, 0)),
                pl.BlockSpec((1, CWp), lambda b: (0, 0)),
            ],
            out_specs=pl.BlockSpec((nb, st, T_ph, CWp),
                                   lambda b: (b, 0, 0, 0)),
        ),
        compiler_params=pltpu.CompilerParams(
            dimension_semantics=("parallel",),
            vmem_limit_bytes=32 * 1024 * 1024,   # explicit, safe on v5e/v6e/v7x
        ),
    )(x_slab, G, eff_bias)

    # Phase-interleave back to time, strip padding, restore NCWT layout.
    out = out.transpose(0, 2, 1, 3).reshape(N_pad, T_ph * st, CWp)
    out = out[:N, :T_out, :CW]
    out = out.transpose(0, 2, 1).reshape(N, C_out, W_out, T_out)
    return out


def reference_forward(x, conv_w, conv_b, A, st, pt, dl, t_out_len):
    """Pure-JAX fp32 reference following the PyTorch module definition."""
    N, C_in, V, T = x.shape
    CK, kt = conv_w.shape[1], conv_w.shape[2]
    K, _, W_out = A.shape
    C_out = CK // K
    y = jnp.zeros((N, CK, V, t_out_len), jnp.float32)
    for j in range(kt):                               # explicit ConvTranspose scatter
        contrib = jnp.einsum('nivt,io->novt', x, conv_w[:, :, j],
                             precision=jax.lax.Precision.HIGHEST)
        for ti in range(T):
            to = ti * st - pt + j * dl
            if 0 <= to < t_out_len:
                y = y.at[:, :, :, to].add(contrib[:, :, :, ti])
    y = y + conv_b[None, :, None, None]
    y = y.reshape(N, C_out, K, V, t_out_len)
    return jnp.einsum('kvw,nckvt->ncwt', A, y,
                      precision=jax.lax.Precision.HIGHEST)


if __name__ == "__main__":
    # extra_dim=1, kernel_size=(2,3), stride=(1,2), padding=(0,1),
    # output_padding=(0,1), dilation=1, groups=1, bias=True
    N, C_in, C_out = 4, 4, 8
    K, V, W_out = 2, 6, 10        # graph kernel size, in_vertices, out_vertices
    T = 16
    kt, st, pt, opt, dl = 3, 2, 1, 1, 1

    key = jax.random.PRNGKey(0)
    kx, kw, kb, ka = jax.random.split(key, 4)
    x = jax.random.normal(kx, (N, C_in, V, T), jnp.float32)
    # ConvTranspose2d weight (C_in, C_out*K, 1, kt) with the size-1 graph tap squeezed
    conv_w = 0.1 * jax.random.normal(kw, (C_in, C_out * K, kt), jnp.float32)
    conv_b = 0.1 * jax.random.normal(kb, (C_out * K,), jnp.float32)
    # computation_kernel of the corresponding convolution: (K, in_vertices, out_vertices)
    A = 0.1 * jax.random.normal(ka, (K, V, W_out), jnp.float32)

    out = graph_conv_transpose(x, conv_w, conv_b, A,
                               stride_t=st, pad_t=pt, out_pad_t=opt, dil_t=dl)
    out = jax.block_until_ready(out)
    T_out = (T - 1) * st - 2 * pt + dl * (kt - 1) + opt + 1
    assert out.shape == (N, C_out, W_out, T_out)

    ref = reference_forward(x, conv_w, conv_b, A, st, pt, dl, T_out)
    # bf16 matmul inputs (fp32 accumulation) vs fp32 HIGHEST-precision reference.
    np.testing.assert_allclose(np.asarray(out), np.asarray(ref),
                               rtol=2e-2, atol=2e-2)
    print("KERNEL_OK")
</pallas_src>

<mosaic_0001>
module attributes {stable_mosaic.version = 11 : i64} {
  func.func @kernel(%arg0: i32, %arg1: memref<32x128xbf16, #tpu.memory_space<vmem>>, %arg2: memref<128x384xbf16, #tpu.memory_space<vmem>>, %arg3: memref<1x128xf32, #tpu.memory_space<vmem>>, %arg4: memref<2x2x16x128xf32, #tpu.memory_space<vmem>>) attributes {dimension_semantics = [#tpu.dimension_semantics<parallel>], iteration_bounds = array<i64: 2>, scalar_prefetch = 0 : i64, scratch_operands = 0 : i64, tpu.core_type = #tpu.core_type<tc>, window_params = [{transform_indices = @transform_0, window_bounds = array<i64: 32, 128>}, {pipeline_mode = #tpu.pipeline_mode<synchronous>, transform_indices = @transform_1, window_bounds = array<i64: 128, 384>}, {pipeline_mode = #tpu.pipeline_mode<synchronous>, transform_indices = @transform_2, window_bounds = array<i64: 1, 128>}, {transform_indices = @transform_3, window_bounds = array<i64: 2, 2, 16, 128>}]} {
    %c0 = arith.constant 0 : index
    %c0_0 = arith.constant 0 : index
    %0 = vector.load %arg3[%c0, %c0_0] : memref<1x128xf32, #tpu.memory_space<vmem>>, vector<1x128xf32>
    %1 = vector.shape_cast %0 : vector<1x128xf32> to vector<1x1x1x128xf32>
    %2 = vector.shape_cast %1 : vector<1x1x1x128xf32> to vector<1x1x1x128xf32>
    %3 = vector.broadcast %2 : vector<1x1x1x128xf32> to vector<2x2x16x128xf32>
    %c0_1 = arith.constant 0 : index
    %c0_2 = arith.constant 0 : index
    %c0_3 = arith.constant 0 : index
    %c0_4 = arith.constant 0 : index
    %4 = vector.load %arg4[%c0_1, %c0_2, %c0_3, %c0_4] : memref<2x2x16x128xf32, #tpu.memory_space<vmem>>, vector<2x2x16x128xf32>
    tpu.vector_store %arg4[%c0_1, %c0_2, %c0_3, %c0_4], %3 {strides = array<i32>} : memref<2x2x16x128xf32, #tpu.memory_space<vmem>>, vector<2x2x16x128xf32>,
    %c0_5 = arith.constant 0 : index
    %c0_6 = arith.constant 0 : index
    %5 = vector.load %arg1[%c0_5, %c0_6] : memref<32x128xbf16, #tpu.memory_space<vmem>>, vector<32x128xbf16>
    %c0_7 = arith.constant 0 : index
    %c0_8 = arith.constant 0 : index
    %6 = vector.load %arg2[%c0_7, %c0_8] : memref<128x384xbf16, #tpu.memory_space<vmem>>, vector<128x384xbf16>
    %cst = arith.constant dense<0.000000e+00> : vector<32x384xf32>
    %7 = tpu.matmul %5, %6, %cst {dimension_numbers = #tpu.dot_dimension_numbers<[1], [0], [0], [1], [0, 0, 1, 1], [], []>} : vector<32x128xbf16>, vector<128x384xbf16>, vector<32x384xf32> -> vector<32x384xf32>
    %8 = vector.shape_cast %7 : vector<32x384xf32> to vector<2x16x384xf32>
    %c0_9 = arith.constant 0 : index
    %c1 = arith.constant 1 : index
    %c0_10 = arith.constant 0 : index
    %c0_11 = arith.constant 0 : index
    %9 = vector.load %arg4[%c0_9, %c1, %c0_10, %c0_11] : memref<2x2x16x128xf32, #tpu.memory_space<vmem>>, vector<2x1x15x128xf32>
    %10 = vector.shape_cast %9 : vector<2x1x15x128xf32> to vector<2x15x128xf32>
    %11 = vector.extract_strided_slice %8 {offsets = [0, 1, 0], sizes = [2, 15, 128], strides = [1, 1, 1]} : vector<2x16x384xf32> to vector<2x15x128xf32>
    %12 = arith.addf %10, %11 : vector<2x15x128xf32>
    %c0_12 = arith.constant 0 : index
    %c1_13 = arith.constant 1 : index
    %c0_14 = arith.constant 0 : index
    %c0_15 = arith.constant 0 : index
    %13 = vector.load %arg4[%c0_12, %c1_13, %c0_14, %c0_15] : memref<2x2x16x128xf32, #tpu.memory_space<vmem>>, vector<2x1x15x128xf32>
    %14 = vector.shape_cast %13 : vector<2x1x15x128xf32> to vector<2x15x128xf32>
    %15 = vector.shape_cast %12 : vector<2x15x128xf32> to vector<2x1x15x128xf32>
    tpu.vector_store %arg4[%c0_12, %c1_13, %c0_14, %c0_15], %15 {strides = array<i32>} : memref<2x2x16x128xf32, #tpu.memory_space<vmem>>, vector<2x1x15x128xf32>,
    %c0_16 = arith.constant 0 : index
    %c0_17 = arith.constant 0 : index
    %c0_18 = arith.constant 0 : index
    %c0_19 = arith.constant 0 : index
    %16 = vector.load %arg4[%c0_16, %c0_17, %c0_18, %c0_19] : memref<2x2x16x128xf32, #tpu.memory_space<vmem>>, vector<2x1x16x128xf32>
    %17 = vector.shape_cast %16 : vector<2x1x16x128xf32> to vector<2x16x128xf32>
    %18 = vector.extract_strided_slice %8 {offsets = [0, 0, 128], sizes = [2, 16, 128], strides = [1, 1, 1]} : vector<2x16x384xf32> to vector<2x16x128xf32>
    %19 = arith.addf %17, %18 : vector<2x16x128xf32>
    %c0_20 = arith.constant 0 : index
    %c0_21 = arith.constant 0 : index
    %c0_22 = arith.constant 0 : index
    %c0_23 = arith.constant 0 : index
    %20 = vector.load %arg4[%c0_20, %c0_21, %c0_22, %c0_23] : memref<2x2x16x128xf32, #tpu.memory_space<vmem>>, vector<2x1x16x128xf32>
    %21 = vector.shape_cast %20 : vector<2x1x16x128xf32> to vector<2x16x128xf32>
    %22 = vector.shape_cast %19 : vector<2x16x128xf32> to vector<2x1x16x128xf32>
    tpu.vector_store %arg4[%c0_20, %c0_21, %c0_22, %c0_23], %22 {strides = array<i32>} : memref<2x2x16x128xf32, #tpu.memory_space<vmem>>, vector<2x1x16x128xf32>,
    %c0_24 = arith.constant 0 : index
    %c1_25 = arith.constant 1 : index
    %c0_26 = arith.constant 0 : index
    %c0_27 = arith.constant 0 : index
    %23 = vector.load %arg4[%c0_24, %c1_25, %c0_26, %c0_27] : memref<2x2x16x128xf32, #tpu.memory_space<vmem>>, vector<2x1x16x128xf32>
    %24 = vector.shape_cast %23 : vector<2x1x16x128xf32> to vector<2x16x128xf32>
    %25 = vector.extract_strided_slice %8 {offsets = [0, 0, 256], sizes = [2, 16, 128], strides = [1, 1, 1]} : vector<2x16x384xf32> to vector<2x16x128xf32>
    %26 = arith.addf %24, %25 : vector<2x16x128xf32>
    %c0_28 = arith.constant 0 : index
    %c1_29 = arith.constant 1 : index
    %c0_30 = arith.constant 0 : index
    %c0_31 = arith.constant 0 : index
    %27 = vector.load %arg4[%c0_28, %c1_29, %c0_30, %c0_31] : memref<2x2x16x128xf32, #tpu.memory_space<vmem>>, vector<2x1x16x128xf32>
    %28 = vector.shape_cast %27 : vector<2x1x16x128xf32> to vector<2x16x128xf32>
    %29 = vector.shape_cast %26 : vector<2x16x128xf32> to vector<2x1x16x128xf32>
    tpu.vector_store %arg4[%c0_28, %c1_29, %c0_30, %c0_31], %29 {strides = array<i32>} : memref<2x2x16x128xf32, #tpu.memory_space<vmem>>, vector<2x1x16x128xf32>,
    return
  }
  func.func @transform_0(%arg0: i32) -> (i32, i32) {
    %c0_i32 = arith.constant 0 : i32
    %c0_i32_0 = arith.constant 0 : i32
    return %arg0, %c0_i32 : i32, i32
  }
  func.func @transform_1(%arg0: i32) -> (i32, i32) {
    %c0_i32 = arith.constant 0 : i32
    %c0_i32_0 = arith.constant 0 : i32
    %c0_i32_1 = arith.constant 0 : i32
    return %c0_i32, %c0_i32_0 : i32, i32
  }
  func.func @transform_2(%arg0: i32) -> (i32, i32) {
    %c0_i32 = arith.constant 0 : i32
    %c0_i32_0 = arith.constant 0 : i32
    %c0_i32_1 = arith.constant 0 : i32
    return %c0_i32, %c0_i32_0 : i32, i32
  }
  func.func @transform_3(%arg0: i32) -> (i32, i32, i32, i32) {
    %c0_i32 = arith.constant 0 : i32
    %c0_i32_0 = arith.constant 0 : i32
    %c0_i32_1 = arith.constant 0 : i32
    %c0_i32_2 = arith.constant 0 : i32
    return %arg0, %c0_i32, %c0_i32_0, %c0_i32_1 : i32, i32, i32, i32
  }
}

</mosaic_0001>

<bundles_post_ra>
// kernel: tpu_custom_call.1
= control target key start
LH: loop header
LB: loop body
LE: loop exit
PB: predicated region body
PF: predicated region fallthrough
CT: control target
= control target key end

     0   :  { %8 = vsyncpa [#allocation3], 0  ;;  %s1231_s0 = inlined_call_operand.hbm [shape: bf16[64,128], index: 0, kind: input, shape index: {}]   ;;  %s1232_s1 = inlined_call_operand.hbm [shape: bf16[128,384], index: 1, kind: input, shape index: {}]   ;;  %s1233_s2 = inlined_call_operand.vmem [shape: f32[1,128], index: 2, kind: input, shape index: {}]   ;;  %s1234_s3 = inlined_call_operand.hbm [shape: f32[4,2,16,128], index: 3, kind: output, shape index: {}]  }
   0x1   :  { %10 = vsyncpa [#allocation3 + $0x1], 0 }
   0x2   :  { %11 = vsyncpa [#allocation6], 0 }
   0x3   :  { %12 = vsyncpa [#allocation4], 0 }
   0x4   :  { %14 = vsyncpa [#allocation4 + $0x1], 0  ;;  %s1001_s12 = smov 0   ;;  %s1003_s13 = smov 0  }
   0x5   :  { %s1005_s14 = smov 0   ;;  %s1007_s15 = smov 0  }
   0x6 LB: > { %s1022_s16 = sadd.s32 4294967295, %s969_s15   ;;  %s650_s17 = sadd.s32 4294967294, %s969_s15   ;;  %s969_s15 = sphi %s1007_s15, %s1254_s15   ;;  %s965_s14 = sphi %s1005_s14, %s1253_s14   ;;  %s961_s13 = sphi %s1003_s13, %s1252_s13   ;;  %s957_s12 = sphi %s1001_s12, %s1251_s12  }
   0x7   : > { %p40_p0 = scmp.ne.s32.totalorder %s961_s13, %s957_s12  ;;  %p1235_p1 = scmp.eq.s32.totalorder %s1022_s16, 0 }
   0x8   : > { %p112_p3 = scmp.eq.s32.totalorder %s650_s17, 1  ;;  %p651_p5 = scmp.ge.s32.totalorder %s969_s15, 1 }
   0x9   : > { %p1031_p4 = por %p1235_p1, %p40_p0  ;;  %p119_p7 = scmp.lt.s32.totalorder %s969_s15, 3 }
   0xa   : > { %p1036_p6 = por %p112_p3, %p40_p0  ;;  %s971_s21 = smov [#allocation5]  }
   0xb   : > { %s1238_s18 = scalar_select %p1031_p4, 1, 0 }
   0xc   : > { %s1239_s19 = scalar_select %p1036_p6, 1, 0 }
   0xd   : > { %p1041_p8 = pnand %p651_p5, %p119_p7  ;;  %s131_s22 = sshll.u32 %s971_s21, 4  ;;  %s1045_s22 = int_to_ptr.vmem [resolvable:$true] %s131_s22 }
   0xe   : > { %s1057_s24 = sadd.s32 1, %s969_s15   ;;  %s27_s25 = sadd.s32 1, %s965_s14 }
   0xf   : > { %s1240_s20 = scalar_select %p1041_p8, 1, 0 }
  0x10   : > { %p751_p9 = pneg %p1041_p8  ;;  %s24_s26 = ssub.s32 %s969_s15, %s1057_s24 }
  0x11   : > { %s841_s29 = scalar_lea.hbm %s1232_s1, 3072 }
  0x12   : > { %p1052_p11 = pnand %p751_p9, %p1235_p1  ;;  %p842_p12 = scmp.ne.s32.totalorder %s1232_s1, %s841_s29 }
  0x13   : > { %p848_p5 = scmp.lt.u32.totalorder %s841_s29, %s1232_s1 }
  0x14   : > { %p843_p13 = pneg %p1052_p11 }
  0x16   : > { %p844_p0 = pnand %p843_p13, %p842_p12 }
  0x18   : > { %p845_p3 = pneg %p844_p0 }
  0x1a   : > { %p850_p7 = pnand %p848_p5, %p845_p3 }
  0x1c   : > { %853 = shalt.err (!%p850_p7)
}
  0x1d   : > { %s854_s7 = scalar_lea.vmem %s1045_s22, 3072  ;;  %p862_p2 = scmp.lt.s32.totalorder %s1045_s22, %s1045_s22 }
  0x1e   : > { %p855_p9 = scmp.ne.s32.totalorder %s1045_s22, %s854_s7  ;;  %p863_p6 = scmp.lt.s32.totalorder %s854_s7, %s854_s7 }
  0x20   : > { %p857_p10 = pnand %p855_p9, %p843_p13  ;;  %p864_p4 = por %p863_p6, %p862_p2 }
  0x22   : > { %p858_p1 = pneg %p857_p10 }
  0x24   : > { %p865_p8 = pnand %p864_p4, %p858_p1 }
  0x26   : > { %868 = shalt.err (!%p865_p8)
}
  0x27   : > { %s972_s8 = smov 192   ;;  %s973_s9 = smov 12  }
  0x28   : > { %754 = dma.hbm_to_vmem [thread:$0]  (!%p1052_p11), %s1232_s1, 3072, %s1045_s22, [#allocation6], %s972_s8, %s972_s8, %s973_s9  }
  0x29   : > { %p25_p2 = scmp.eq.s32.totalorder %s24_s26, 0  ;;  %p34_p1 = scmp.ne.s32.totalorder %s965_s14, %s961_s13 }
  0x2a   : > { %p35_p4 = scmp.eq.s32.totalorder %s969_s15, 0  ;;  %p764_p6 = scmp.lt.s32.totalorder %s969_s15, 2 }
  0x2b   : > { %s1088_s17 = scalar_select %p25_p2, %s965_s14, %s27_s25  }
  0x2c   : > { %p36_p8 = por %p35_p4, %p34_p1  ;;  %p1242_p10 = scmp.eq.s32.totalorder %s1022_s16, 1 }
  0x2d   : > { %s148_s27 = sand.u32 1, %s965_s14   ;;  %s710_s28 = sshll.u32 %s969_s15, 8 }
  0x2e   : > { %p1092_p12 = por %p1242_p10, %p34_p1  ;;  %s654_s29 = sshll.u32 %s148_s27, 4 }
  0x2f   : > { %s1101_s4 = scalar_lea.hbm %s1231_s0, %s710_s28  ;;  %s152_s22 = scalar_lea.vmem [#allocation2], %s654_s29 }
  0x30   : > { %s159_s25 = sshll.u32 %s152_s22, 4  ;;  %p1103_p11 = pnand %p764_p6, %p36_p8  ;;  %s1107_s25 = int_to_ptr.vmem [resolvable:$true] %s159_s25 }
  0x31   : > { %s1109_s5 = scalar_lea.sflag [#allocation3], %s148_s27  ;;  %s869_s6 = scalar_lea.hbm %s1101_s4, 256 }
  0x32   : > { %p870_p13 = scmp.ne.s32.totalorder %s1101_s4, %s869_s6  ;;  %p871_p0 = pneg %p1103_p11 }
  0x33   : > { %s874_s9 = scalar_lea.hbm %s1231_s0, 512  ;;  %p875_p7 = scmp.lt.u32.totalorder %s1101_s4, %s1231_s0 }
  0x34   : > { %p872_p3 = pnand %p871_p0, %p870_p13  ;;  %p876_p9 = scmp.lt.u32.totalorder %s874_s9, %s869_s6 }
  0x35   : > { %p878_p1 = scmp.lt.u32.totalorder %s869_s6, %s1101_s4 }
  0x36   : > { %p873_p5 = pneg %p872_p3  ;;  %p877_p2 = por %p876_p9, %p875_p7 }
  0x38   : > { %p879_p4 = por %p878_p1, %p877_p2 }
  0x3a   : > { %p880_p6 = pnand %p879_p4, %p873_p5 }
  0x3c   : > { %883 = shalt.err (!%p880_p6)
}
  0x3d   : > { %s884_s27 = scalar_lea.vmem %s1107_s25, 256  ;;  %s974_s28 = smov [#allocation2]  }
  0x3e   : > { %p885_p8 = scmp.ne.s32.totalorder %s1107_s25, %s884_s27  ;;  %s889_s29 = sshll.u32 %s974_s28, 4  ;;  %s890_s29 = int_to_ptr.vmem [resolvable:$false] %s889_s29 }
  0x3f   : > { %s891_s23 = scalar_lea.vmem %s890_s29, 512  ;;  %p892_p3 = scmp.lt.s32.totalorder %s1107_s25, %s890_s29 }
  0x40   : > { %p887_p10 = pnand %p885_p8, %p871_p0  ;;  %p893_p7 = scmp.lt.s32.totalorder %s891_s23, %s884_s27 }
  0x42   : > { %p888_p13 = pneg %p887_p10  ;;  %p894_p9 = por %p893_p7, %p892_p3 }
  0x44   : > { %p895_p2 = pnand %p894_p9, %p888_p13 }
  0x46   : > { %898 = shalt.err (!%p895_p2)
}
  0x47   : > { %s975_s30 = smov 64   ;;  %s976_s22 = smov 4  }
  0x48   : > { %758 = dma.hbm_to_vmem [thread:$0]  (!%p1103_p11), %s1101_s4, 256, %s1107_s25, %s1109_s5, %s975_s30, %s975_s30, %s976_s22  }
  0x49   : > { %p1245_p0 = scmp.ne.s32.totalorder %s1240_s20, 0 }
  0x4a   : > { %s1140_s6 = sand.u32 (!%p1245_p0), 1, %s961_s13   ;;  %p1246_p5 = scmp.ne.s32.totalorder (!%p1245_p0), %s1238_s18, 0 }
  0x4b   : > { %171 = sbr.rel (%p1245_p0) target bundleno = 370 (0x172), region = 32  ;;  %s658_s7 = sshll.u32 (!%p1245_p0), %s1140_s6, 4 }
  0x4c   : > { %s174_s8 = scalar_lea.sflag (!%p1245_p0), [#allocation3], %s1140_s6  ;;  %s1144_s9 = scalar_lea.vmem (!%p1245_p0), [#allocation2], %s658_s7 }
  0x52   : > { %944 = dma.done.wait (%p1246_p5), %s174_s8, 256  }
  0x53   : > { %946 = vsyncadd (%p1246_p5), %s174_s8, 4294967040  ;;  %p1247_p11 = scmp.eq.s32.totalorder %s1022_s16, 0 }
  0x55   : > { %948 = dma.done.wait (%p1247_p11), [#allocation6], 3072   ;;  %p1248_p1 = pmov %p1247_p11 }
  0x56   : > { %v977_v0 = vmov 0   ;;  %v807_v1 = vld [vmem:[#allocation5 + $0x4] ss:$12 sps:$4 sm:$0xff]   ;;  %v809_v2 = vld [vmem:[#allocation5] ss:$12 sps:$4 sm:$0xff]   ;;  %s660_s18 = sshll.u32 %s1140_s6, 6 }
  0x57   : > { %950 = vsyncadd (%p1248_p1), [#allocation6], 4294964224  ;;  %430 = vmatprep.mubr.bf16.mxu0 %v977_v0  ;;  %398 = vmatprep.subr.bf16.mxu0 %v807_v1  ;;  %v810_v3 = vld [vmem:[#allocation5 + $0x1c] ss:$12 sps:$4 sm:$0xff]   ;;  %v812_v4 = vld [vmem:[#allocation5 + $0x18] ss:$12 sps:$4 sm:$0xff]  }
  0x58   : > { %399 = vmatpush1.bf16.msra.mxu0 %v809_v2  ;;  %v813_v5 = vld [vmem:[#allocation5 + $0x34] ss:$12 sps:$4 sm:$0xff]   ;;  %v815_v7 = vld [vmem:[#allocation5 + $0x30] ss:$12 sps:$4 sm:$0xff]   ;;  %v817_v9 = vld [vmem:[#allocation5 + $0x4c] ss:$12 sps:$4 sm:$0xff]  }
  0x59   : > { %400 = vmatprep.subr.bf16.mxu0 %v810_v3  ;;  %v816_v6 = vld [vmem:[#allocation5 + $0x8] ss:$12 sps:$4 sm:$0xff]   ;;  %v820_v8 = vld [vmem:[#allocation5 + $0x20] ss:$12 sps:$4 sm:$0xff]   ;;  %v824_v10 = vld [vmem:[#allocation5 + $0x38] ss:$12 sps:$4 sm:$0xff]  }
  0x5a   : > { %723 = vmatprep.subr.bf16.mxu1 %v816_v6  ;;  %v819_v11 = vld [vmem:[#allocation5 + $0x48] ss:$12 sps:$4 sm:$0xff]   ;;  %v821_v12 = vld [vmem:[#allocation5 + $0x64] ss:$12 sps:$4 sm:$0xff]   ;;  %v823_v14 = vld [vmem:[#allocation5 + $0x60] ss:$12 sps:$4 sm:$0xff]  }
  0x5b   : > { %724 = vmatpush3.bf16.msra.mxu1 %v816_v6  ;;  %v828_v13 = vld [vmem:[#allocation5 + $0x50] ss:$12 sps:$4 sm:$0xff]   ;;  %v832_v16 = vld [vmem:[#allocation5 + $0x68] ss:$12 sps:$4 sm:$0xff]   ;;  %v827_v17 = vld [vmem:[#allocation5 + $0x78] ss:$12 sps:$4 sm:$0xff]  }
  0x5c   : > { %401 = vmatpush1.bf16.msra.mxu0 %v812_v4  ;;  %725 = vmatprep.subr.bf16.mxu1 %v820_v8  ;;  %v825_v15 = vld [vmem:[#allocation5 + $0x7c] ss:$12 sps:$4 sm:$0xff]   ;;  %v837_v18 = vld [vmem:[%s1144_s9] sm:$0xff]   ;;  %v833_v22 = vld [vmem:[#allocation5 + $0xac] ss:$12 sps:$4 sm:$0xff]   ;;  %s1160_s25 = scalar_lea.vmem [#allocation7], %s660_s18 }
  0x5d   : > { %402 = vmatprep.subr.bf16.mxu0 %v813_v5  ;;  %v829_v19 = vld [vmem:[#allocation5 + $0x94] ss:$12 sps:$4 sm:$0xff]   ;;  %739 = vmatprep.mubr.bf16.mxu1 %v837_v18  ;;  %v831_v21 = vld [vmem:[#allocation5 + $0x90] ss:$12 sps:$4 sm:$0xff]   ;;  %v838_v23 = vld [vmem:[#allocation5 + $0x98] ss:$12 sps:$4 sm:$0xff]  }
  0x5e   : > { %v836_v20 = vld [vmem:[#allocation5 + $0x80] ss:$12 sps:$4 sm:$0xff]   ;;  %v835_v24 = vld [vmem:[#allocation5 + $0xa8] ss:$12 sps:$4 sm:$0xff]   ;;  %v839_v25 = vld [vmem:[#allocation5 + $0xb0] ss:$12 sps:$4 sm:$0xff]  }
  0x5f   : > { %726 = vmatpush3.bf16.msra.mxu1 %v820_v8  ;;  %v840_v26 = vld [vmem:[%s1144_s9 + $0x8] sm:$0xff]   ;;  %v661_v27 = vld [vmem:[%s1233_s2] ss:$0 sm:$0xff]  ;;  %vm509_vm0 = vcmask 1046528   ;;  %s712_s26 = sshll.u32 %s1022_s16, 10  ;;  %s567_s5 = sshll.u32 %s1160_s25, 4  ;;  %s1186_s5 = int_to_ptr.vmem [resolvable:$true] %s567_s5 }
  0x60   : > { %403 = vmatpush1.bf16.msra.mxu0 %v815_v7  ;;  %727 = vmatprep.subr.bf16.mxu1 %v824_v10  ;;  %217 = vst [vmem:[%s1160_s25 + $0x18] sm:$0xff] %v661_v27  ;;  %221 = vst [vmem:[%s1160_s25 + $0x38] sm:$0xff] %v661_v27  ;;  %s1184_s27 = scalar_lea.hbm %s1234_s3, %s712_s26  ;;  %s553_s28 = scalar_lea.sflag [#allocation4], %s1140_s6 }
  0x61   : > { %404 = vmatprep.subr.bf16.mxu0 %v817_v9  ;;  %s899_s29 = scalar_lea.vmem %s1186_s5, 1024  ;;  %s978_s16 = smov [#allocation7]  }
  0x62   : > { %p900_p4 = scmp.ne.s32.totalorder %s1186_s5, %s899_s29  ;;  %s903_s23 = sshll.u32 %s978_s16, 4  ;;  %s904_s23 = int_to_ptr.vmem [resolvable:$false] %s903_s23 }
  0x63   : > { %728 = vmatpush3.bf16.msra.mxu1 %v824_v10  ;;  %s905_s30 = scalar_lea.vmem %s904_s23, 2048  ;;  %p906_p10 = scmp.lt.s32.totalorder %s1186_s5, %s904_s23 }
  0x64   : > { %405 = vmatpush1.bf16.msra.mxu0 %v819_v11  ;;  %729 = vmatprep.subr.bf16.mxu1 %v828_v13  ;;  %p901_p6 = pnand %p900_p4, %p1092_p12  ;;  %p907_p13 = scmp.lt.s32.totalorder %s905_s30, %s899_s29 }
  0x65   : > { %406 = vmatprep.subr.bf16.mxu0 %v821_v12 }
  0x66   : > { %p902_p8 = pneg %p901_p6  ;;  %p908_p3 = por %p907_p13, %p906_p10 }
  0x67   : > { %730 = vmatpush3.bf16.msra.mxu1 %v828_v13  ;;  %v689_v32 = vld [vmem:[%s1160_s25 + $0x18] sm:$0x7f] }
  0x68   : > { %407 = vmatpush1.bf16.msra.mxu0 %v823_v14  ;;  %731 = vmatprep.subr.bf16.mxu1 %v832_v16  ;;  %v691_v49 = vld [vmem:[%s1160_s25 + $0x38] sm:$0x7f]  ;;  %p909_p7 = pnand %p908_p3, %p902_p8 }
  0x69   : > { %408 = vmatprep.subr.bf16.mxu0 %v825_v15 }
  0x6b   : > { %732 = vmatpush3.bf16.msra.mxu1 %v832_v16 }
  0x6c   : > { %409 = vmatpush1.bf16.msra.mxu0 %v827_v17  ;;  %733 = vmatprep.subr.bf16.mxu1 %v836_v20 }
  0x6d   : > { %410 = vmatprep.subr.bf16.mxu0 %v829_v19 }
  0x6f   : > { %734 = vmatpush3.bf16.msra.mxu1 %v836_v20 }
  0x70   : > { %411 = vmatpush1.bf16.msra.mxu0 %v831_v21  ;;  %735 = vmatprep.subr.bf16.mxu1 %v838_v23 }
  0x71   : > { %412 = vmatprep.subr.bf16.mxu0 %v833_v22 }
  0x73   : > { %736 = vmatpush3.bf16.msra.mxu1 %v838_v23 }
  0x74   : > { %413 = vmatpush1.bf16.msra.mxu0 %v835_v24  ;;  %737 = vmatprep.subr.bf16.mxu1 %v839_v25 }
  0x77   : > { %431 = vmatmul.mubr.bf16.vlgmr.msra.gmra.mrb[0].mxu0 %v837_v18  ;;  %738 = vmatpush3.bf16.msra.mxu1 %v839_v25 }
  0x78   : > { %440 = vmatprep.mubr.bf16.mxu0 %v977_v0 }
  0x7a   : > { %740 = vmatmul.mubr.bf16.vlgmr.msra.gmra.mrb[0].mxu1 %v840_v26 }
  0x7f   : > { %441 = vmatmul.mubr.bf16.gmra.mrb[4].mxu0 %v840_v26 }
 0x14a   : > { %v432_v28 = vpop.f32.mrb[0].mxu0 }
 0x14b   : > { %v434_v29 = vpop.f32.mrb[1].mxu0  ;;  %v510_v33 = vrot.slane %v432_v28, 1 }
 0x14c   : > { %v532_v30 = vadd.f32 %v661_v27, %v434_v29  ;;  %v436_v31 = vpop.f32.mrb[2].mxu0 }
 0x14d   : > { %v511_v34 = vrot.slane %v436_v31, 1  ;;  %v438_v35 = vpop.f32.mrb[3].mxu0  ;;  %v741_v37 = vpop.f32.mrb[0].mxu1 }
 0x14e   : > { %536 = vst [vmem:[%s1160_s25] sm:$0xff] %v532_v30  ;;  %v533_v36 = vadd.f32 %v661_v27, %v438_v35  ;;  %v485_v40 = vpop.f32.mrb[1].mxu1 }
 0x14f   : > { %v512_v38 = vsel %vm509_vm0, %v510_v33, %v511_v34  ;;  %v521_v39 = vadd.f32 %v689_v32, %v511_v34  ;;  %v742_v42 = vpop.f32.mrb[2].mxu1 }
 0x150   : > { %v520_v41 = vadd.f32 %v661_v27, %v512_v38  ;;  %537 = vst [vmem:[%s1160_s25 + $0x8] sm:$0xff] %v533_v36  ;;  %v488_v43 = vpop.f32.mrb[3].mxu1 }
 0x151   : > { %693 = vst [vmem:[%s1160_s25 + $0x18] sm:$0x7f] %v521_v39 }
 0x152   : > { %v442_v44 = vpop.f32.mrb[4].mxu0  ;;  %v544_v45 = vadd.f32 %v520_v41, %v485_v40 }
 0x153   : > { %v444_v46 = vpop.f32.mrb[5].mxu0  ;;  %v513_v50 = vrot.slane %v442_v44, 1 }
 0x154   : > { %v534_v47 = vadd.f32 %v661_v27, %v444_v46  ;;  %v446_v48 = vpop.f32.mrb[6].mxu0  ;;  %700 = vst [vmem:[%s1160_s25 + $0x10] sm:$0xff] %v544_v45 }
 0x155   : > { %v514_v51 = vrot.slane %v446_v48, 1  ;;  %v448_v52 = vpop.f32.mrb[7].mxu0 }
 0x156   : > { %538 = vst [vmem:[%s1160_s25 + $0x20] sm:$0xff] %v534_v47  ;;  %v535_v53 = vadd.f32 %v661_v27, %v448_v52 }
 0x157   : > { %v515_v54 = vsel %vm509_vm0, %v513_v50, %v514_v51  ;;  %v523_v55 = vadd.f32 %v691_v49, %v514_v51 }
 0x158   : > { %v522_v56 = vadd.f32 %v661_v27, %v515_v54  ;;  %539 = vst [vmem:[%s1160_s25 + $0x28] sm:$0xff] %v535_v53  ;;  %v697_v57 = vld [vmem:[%s1160_s25 + $0x18] sm:$0xff] }
 0x159   : > { %695 = vst [vmem:[%s1160_s25 + $0x38] sm:$0x7f] %v523_v55  ;;  %v545_v58 = vadd.f32 %v697_v57, %v488_v43 }
 0x15a   : > { %v546_v59 = vadd.f32 %v741_v37, %v522_v56 }
 0x15b   : > { %701 = vst [vmem:[%s1160_s25 + $0x18] sm:$0xff] %v545_v58 }
 0x15c   : > { %702 = vst [vmem:[%s1160_s25 + $0x30] sm:$0xff] %v546_v59 }
 0x160   : > { %v699_v60 = vld [vmem:[%s1160_s25 + $0x38] sm:$0xff] }
 0x161   : > { %v547_v61 = vadd.f32 %v742_v42, %v699_v60 }
 0x163   : > { %703 = vst [vmem:[%s1160_s25 + $0x38] sm:$0xff] %v547_v61 }
 0x164   : > { %912 = shalt.err (!%p909_p7)
}
 0x165   : > { %s913_s22 = scalar_lea.hbm %s1184_s27, 1024  ;;  %s917_s9 = scalar_lea.hbm %s1234_s3, 2048 }
 0x166   : > { %p914_p9 = scmp.ne.s32.totalorder %s1184_s27, %s913_s22  ;;  %p918_p5 = scmp.lt.u32.totalorder %s1184_s27, %s1234_s3 }
 0x167   : > { %p919_p11 = scmp.lt.u32.totalorder %s917_s9, %s913_s22  ;;  %p921_p4 = scmp.lt.u32.totalorder %s913_s22, %s1184_s27 }
 0x168   : > { %p915_p2 = pnand %p914_p9, %p1092_p12 }
 0x169   : > { %p920_p1 = por %p919_p11, %p918_p5 }
 0x16a   : > { %p916_p0 = pneg %p915_p2 }
 0x16b   : > { %p922_p6 = por %p921_p4, %p920_p1 }
 0x16d   : > { %p923_p8 = pnand %p922_p6, %p916_p0 }
 0x16f   : > { %926 = shalt.err (!%p923_p8)
}
 0x170   : > { %s979_s4 = smov 128   ;;  %s980_s25 = smov 8  }
 0x171   : > { %749 = dma.vmem_to_hbm [thread:$0]  (%p1092_p12), %s1186_s5, 1024, %s1184_s27, %s553_s28, %s979_s4, %s979_s4, %s980_s25  }
 0x172 PF: > { %s582_s26 = sand.u32 1, %s957_s12   ;;  %p1249_p10 = scmp.ne.s32.totalorder %s1239_s19, 0 }
 0x173   : > { %p1250_p13 = scmp.ge.s32.totalorder %s969_s15, 2  ;;  %s583_s10 = scalar_lea.sflag [#allocation4], %s582_s26 }
 0x175   : > { %p760_p3 = pnand %p1250_p13, %p1249_p10 }
 0x177   : > { %952 = dma.done.wait (!%p760_p3), %s583_s10, 1024  }
 0x178   : > { %954 = vsyncadd (!%p760_p3), %s583_s10, 4294966272  ;;  %p17_p7 = scmp.ge.s32.totalorder %s1057_s24, 4   ;;  %s1251_s12 = smov %s961_s13 }
 0x179   : > { %s1252_s13 = smov %s965_s14  ;;  %s1253_s14 = smov %s1088_s17 }
 0x17a   : > { %s1254_s15 = smov %s1057_s24  ;;  %19 = sbr.rel (!%p17_p7) target bundleno = 6 (0x6), region = 82 }
 0x181   :  { %588 = vsyncpa [#allocation3], 1 }
 0x182   :  { %590 = vsyncpa [#allocation3 + $0x1], 1 }
 0x183   :  { %591 = vsyncpa [#allocation6], 1 }
 0x184   :  { %592 = vsyncpa [#allocation4], 1 }
 0x185   :  { %594 = vsyncpa [#allocation4 + $0x1], 1 }

</bundles_post_ra>
